<compile_context>
chip_gen: v6e
topology: v6e:2x2x1
jax: 0.10.0
libtpu: 0.0.40
codegen_flags: <defaults>
</compile_context>

<pallas_src>
import jax
import jax.numpy as jnp
from jax import lax
from jax.experimental import pallas as pl
from jax.experimental.pallas import tpu as pltpu

BASE_WIDTH = [8, 12, 16, 20]
OVERLAP = 1.0


# ---------------------------------------------------------------------------
# Pallas kernel: one layer per grid step, two MXU matmuls, one store.
# ---------------------------------------------------------------------------
def _tproj_kernel(w_ref, p_ref, m_ref, o_ref):
    """OUT_l = (P_l^T @ W_l) @ kron(Q_l, I_K)  (kron built in the wrapper)."""
    f32 = jnp.float32
    w = w_ref[0]          # (cout, cin*K)    lane axis = cin*K
    p = p_ref[0]          # (cout, cout_p)
    m = m_ref[0]          # (cin*K, lanes)   lanes = pad(cin_p*K, 128)

    # Step 1 (MXU): X[o, j*K+s] = sum_i P[i, o] * W[i, j*K+s]
    x = lax.dot_general(p, w, (((0,), (0,)), ((), ())),
                        preferred_element_type=f32,
                        precision=lax.Precision.HIGHEST)       # (cout_p, cin*K)

    # Step 2 (MXU): OUT = X @ kron(Q, I_K)   (lane-dense padded columns)
    out = jnp.dot(x, m, preferred_element_type=f32,
                  precision=lax.Precision.HIGHEST)             # (cout_p, lanes)

    o_ref[0] = out.astype(o_ref.dtype)


# ---------------------------------------------------------------------------
# Wrappers
# ---------------------------------------------------------------------------
def tprojection_forward_stacked(meta_weights, P, Q):
    """Batched TProjection forward for L same-shaped layers in ONE pallas_call.

    meta_weights: (L, cout, cin, kh, kw); P: (L, cout, cout_p); Q: (L, cin, cin_p)
    Returns: (L, cout_p, cin_p, kh, kw)
    """
    L, cout, cin, kh, kw = meta_weights.shape
    cout_p = P.shape[-1]
    cin_p = Q.shape[-1]
    K = kh * kw
    out_cols = cin_p * K
    lanes = ((out_cols + 127) // 128) * 128          # lane-dense output slab

    # Zero-copy 2-D view of the OIHW conv weights; no XLA transposes anywhere.
    w_flat = meta_weights.reshape(L, cout, cin * K)

    # kron(Q_l, I_K):  M[l, j*K+s, t*K+u] = Q[l, j, t] * (s == u)
    eye_k = jnp.eye(K, dtype=jnp.float32)
    M = (Q[:, :, None, :, None].astype(jnp.float32)
         * eye_k[None, None, :, None, :]).reshape(L, cin * K, out_cols)
    if lanes != out_cols:
        M = jnp.pad(M, ((0, 0), (0, 0), (0, lanes - out_cols)))

    flops = 2 * L * (cout * cout_p * cin * K          # step 1
                     + cout_p * (cin * K) * lanes)    # step 2
    bytes_accessed = 4 * L * (cout * cin * K + cout * cout_p
                              + cin * K * lanes + cout_p * lanes)

    out_flat = pl.pallas_call(
        _tproj_kernel,
        out_shape=jax.ShapeDtypeStruct((L, cout_p, lanes), meta_weights.dtype),
        grid_spec=pltpu.PrefetchScalarGridSpec(
            num_scalar_prefetch=0,
            grid=(L,),
            in_specs=[
                pl.BlockSpec((1, cout, cin * K), lambda l: (l, 0, 0)),
                pl.BlockSpec((1, cout, cout_p), lambda l: (l, 0, 0)),
                pl.BlockSpec((1, cin * K, lanes), lambda l: (l, 0, 0)),
            ],
            out_specs=pl.BlockSpec((1, cout_p, lanes), lambda l: (l, 0, 0)),
        ),
        compiler_params=pltpu.CompilerParams(
            # Layer axis is fully independent: sharded across the two
            # TensorCores on v7x; no effect (but harmless) on v5e/v6e.
            dimension_semantics=("parallel",)),
        cost_estimate=pl.CostEstimate(
            flops=flops, transcendentals=0, bytes_accessed=bytes_accessed),
    )(w_flat, P, M)

    # Drop lane padding; free row-major reshape back to OIHW.
    return out_flat[:, :, :out_cols].reshape(L, cout_p, cin_p, kh, kw)


def tprojection_forward(meta_weights, P, Q):
    """Single-layer module forward (matches TProjection.forward).

    meta_weights: (cout, cin, kh, kw); P: (cout, cout_p); Q: (cin, cin_p).
    DETACH_PQ only affects autograd in the PyTorch module; forward math is
    identical, so it needs no equivalent here.
    """
    out = tprojection_forward_stacked(meta_weights[None], P[None], Q[None])
    return out[0]


# ---------------------------------------------------------------------------
# Deterministic parameter init replicating TProjection._init_projection.
# ---------------------------------------------------------------------------
def init_projection(key, meta_c, curr_c, candidate_width, overlap=OVERLAP):
    if meta_c == curr_c and curr_c in (1, 3):
        return jnp.eye(curr_c, dtype=jnp.float32)
    W = jnp.zeros((meta_c, curr_c), dtype=jnp.float32)
    ind = candidate_width.index(curr_c)
    cum_c = 0
    if ind != 0:
        for id_p in range(ind):
            cum_c += int((1 - overlap) * candidate_width[id_p])
    W = W.at[cum_c:cum_c + curr_c, :].set(jnp.eye(curr_c, dtype=jnp.float32))
    W = W + jax.random.normal(key, (meta_c, curr_c), dtype=jnp.float32) * 0.01
    return W


if __name__ == "__main__":
    # Shapes consistent with the module: meta (cout, cin) = (20, 16),
    # projected (cout_p, cin_p) = (12, 8), 3x3 conv kernels.
    cin, cout = 16, 20
    cin_p, cout_p = 8, 12
    kh = kw = 3

    key = jax.random.PRNGKey(0)
    k_meta, k_p, k_q = jax.random.split(key, 3)

    # --- single-layer forward (module semantics) ---------------------------
    meta_weights = jax.random.normal(k_meta, (cout, cin, kh, kw), dtype=jnp.float32)
    P = init_projection(k_p, cout, cout_p, BASE_WIDTH)   # (cout, cout_p)
    Q = init_projection(k_q, cin, cin_p, BASE_WIDTH)     # (cin, cin_p)

    projected = jax.block_until_ready(tprojection_forward(meta_weights, P, Q))
    ref = jnp.einsum('ijhw,io,jt->othw', meta_weights, P, Q,
                     precision=lax.Precision.HIGHEST)
    assert projected.shape == (cout_p, cin_p, kh, kw)
    assert jnp.allclose(projected, ref, atol=1e-4, rtol=1e-4)

    # --- batched forward: several same-shaped layers in one pallas_call ----
    L = 4
    k_mb, k_pb, k_qb = jax.random.split(jax.random.PRNGKey(1), 3)
    meta_b = jax.random.normal(k_mb, (L, cout, cin, kh, kw), dtype=jnp.float32)
    P_b = jnp.stack([init_projection(k, cout, cout_p, BASE_WIDTH)
                     for k in jax.random.split(k_pb, L)])
    Q_b = jnp.stack([init_projection(k, cin, cin_p, BASE_WIDTH)
                     for k in jax.random.split(k_qb, L)])

    projected_b = jax.block_until_ready(
        tprojection_forward_stacked(meta_b, P_b, Q_b))
    ref_b = jnp.einsum('lijhw,lio,ljt->lothw', meta_b, P_b, Q_b,
                       precision=lax.Precision.HIGHEST)
    assert projected_b.shape == (L, cout_p, cin_p, kh, kw)
    assert jnp.allclose(projected_b, ref_b, atol=1e-4, rtol=1e-4)

    print("KERNEL_OK")
</pallas_src>

<mosaic_0001>
module attributes {stable_mosaic.version = 11 : i64} {
  func.func @_tproj_kernel(%arg0: i32, %arg1: memref<1x20x144xf32, #tpu.memory_space<vmem>>, %arg2: memref<1x20x12xf32, #tpu.memory_space<vmem>>, %arg3: memref<1x144x128xf32, #tpu.memory_space<vmem>>, %arg4: memref<1x12x128xf32, #tpu.memory_space<vmem>>) attributes {dimension_semantics = [#tpu.dimension_semantics<parallel>], iteration_bounds = array<i64: 1>, scalar_prefetch = 0 : i64, scratch_operands = 0 : i64, tpu.core_type = #tpu.core_type<tc>, window_params = [{transform_indices = @transform_0, window_bounds = array<i64: 1, 20, 144>}, {transform_indices = @transform_1, window_bounds = array<i64: 1, 20, 12>}, {transform_indices = @transform_2, window_bounds = array<i64: 1, 144, 128>}, {transform_indices = @transform_3, window_bounds = array<i64: 1, 12, 128>}]} {
    %c0 = arith.constant 0 : index
    %c0_0 = arith.constant 0 : index
    %c0_1 = arith.constant 0 : index
    %0 = vector.load %arg1[%c0, %c0_0, %c0_1] : memref<1x20x144xf32, #tpu.memory_space<vmem>>, vector<1x20x144xf32>
    %1 = vector.shape_cast %0 : vector<1x20x144xf32> to vector<20x144xf32>
    %c0_2 = arith.constant 0 : index
    %c0_3 = arith.constant 0 : index
    %c0_4 = arith.constant 0 : index
    %2 = vector.load %arg2[%c0_2, %c0_3, %c0_4] : memref<1x20x12xf32, #tpu.memory_space<vmem>>, vector<1x20x12xf32>
    %3 = vector.shape_cast %2 : vector<1x20x12xf32> to vector<20x12xf32>
    %c0_5 = arith.constant 0 : index
    %c0_6 = arith.constant 0 : index
    %c0_7 = arith.constant 0 : index
    %4 = vector.load %arg3[%c0_5, %c0_6, %c0_7] : memref<1x144x128xf32, #tpu.memory_space<vmem>>, vector<1x144x128xf32>
    %5 = vector.shape_cast %4 : vector<1x144x128xf32> to vector<144x128xf32>
    %cst = arith.constant dense<0.000000e+00> : vector<12x144xf32>
    %6 = tpu.matmul %3, %1, %cst {dimension_numbers = #tpu.dot_dimension_numbers<[0], [0], [1], [1], [0, 1, 1, 1], [], []>, precision = #tpu.contract_precision<fp32>} : vector<20x12xf32>, vector<20x144xf32>, vector<12x144xf32> -> vector<12x144xf32>
    %cst_8 = arith.constant dense<0.000000e+00> : vector<12x128xf32>
    %7 = tpu.matmul %6, %5, %cst_8 {dimension_numbers = #tpu.dot_dimension_numbers<[1], [0], [0], [1], [0, 0, 1, 1], [], []>, precision = #tpu.contract_precision<fp32>} : vector<12x144xf32>, vector<144x128xf32>, vector<12x128xf32> -> vector<12x128xf32>
    %c0_9 = arith.constant 0 : index
    %c0_10 = arith.constant 0 : index
    %c0_11 = arith.constant 0 : index
    %8 = vector.load %arg4[%c0_9, %c0_10, %c0_11] : memref<1x12x128xf32, #tpu.memory_space<vmem>>, vector<1x12x128xf32>
    %9 = vector.shape_cast %8 : vector<1x12x128xf32> to vector<12x128xf32>
    %10 = vector.shape_cast %7 : vector<12x128xf32> to vector<1x12x128xf32>
    tpu.vector_store %arg4[%c0_9, %c0_10, %c0_11], %10 {strides = array<i32>} : memref<1x12x128xf32, #tpu.memory_space<vmem>>, vector<1x12x128xf32>,
    return
  }
  func.func @transform_0(%arg0: i32) -> (i32, i32, i32) {
    %c0_i32 = arith.constant 0 : i32
    %c0_i32_0 = arith.constant 0 : i32
    %c0_i32_1 = arith.constant 0 : i32
    return %arg0, %c0_i32, %c0_i32_0 : i32, i32, i32
  }
  func.func @transform_1(%arg0: i32) -> (i32, i32, i32) {
    %c0_i32 = arith.constant 0 : i32
    %c0_i32_0 = arith.constant 0 : i32
    %c0_i32_1 = arith.constant 0 : i32
    return %arg0, %c0_i32, %c0_i32_0 : i32, i32, i32
  }
  func.func @transform_2(%arg0: i32) -> (i32, i32, i32) {
    %c0_i32 = arith.constant 0 : i32
    %c0_i32_0 = arith.constant 0 : i32
    %c0_i32_1 = arith.constant 0 : i32
    return %arg0, %c0_i32, %c0_i32_0 : i32, i32, i32
  }
  func.func @transform_3(%arg0: i32) -> (i32, i32, i32) {
    %c0_i32 = arith.constant 0 : i32
    %c0_i32_0 = arith.constant 0 : i32
    %c0_i32_1 = arith.constant 0 : i32
    return %arg0, %c0_i32, %c0_i32_0 : i32, i32, i32
  }
}

</mosaic_0001>

<bundles_post_ra>
// kernel: tpu_custom_call.1
= control target key start
LH: loop header
LB: loop body
LE: loop exit
PB: predicated region body
PF: predicated region fallthrough
CT: control target
= control target key end

     0   :  { %8 = vsyncpa [#allocation3], 0  ;;  %s1443_s12 = smov [#allocation2]   ;;  %s2036_s0 = inlined_call_operand.vmem [shape: f32[1,20,144], index: 0, kind: input, shape index: {}]   ;;  %s2037_s1 = inlined_call_operand.vmem [shape: f32[1,20,12], index: 1, kind: input, shape index: {}]   ;;  %s2038_s2 = inlined_call_operand.hbm [shape: f32[1,144,128], index: 2, kind: input, shape index: {}]   ;;  %s2039_s3 = inlined_call_operand.vmem [shape: f32[1,12,128], index: 3, kind: output, shape index: {}]  }
   0x1   :  { %s18_s13 = sshll.u32 %s1443_s12, 4  ;;  %s19_s13 = int_to_ptr.vmem [resolvable:$true] %s18_s13 }
   0x2   :  { %s1429_s14 = scalar_lea.vmem %s19_s13, 2304  ;;  %p1434_p1 = scmp.lt.s32.totalorder %s19_s13, %s19_s13 }
   0x3   :  { %p1430_p0 = scmp.ne.s32.totalorder %s19_s13, %s1429_s14  ;;  %p1435_p2 = scmp.lt.s32.totalorder %s1429_s14, %s1429_s14 }
   0x5   :  { %p1436_p3 = por %p1435_p2, %p1434_p1 }
   0x7   :  { %p1437_p4 = pnand %p1436_p3, %p1430_p0 }
   0x9   :  { %1440 = shalt.err (!%p1437_p4)
}
   0xa   :  { %s1444_s15 = smov 128   ;;  %s1445_s16 = smov 8  }
   0xb   :  { %24 = dma.hbm_to_vmem [thread:$0]  %s2038_s2, 2304, %s19_s13, [#allocation3], %s1444_s15, %s1444_s15, %s1445_s16  }
   0xc   :  { %1441 = dma.done.wait [#allocation3], 2304  }
   0xd   :  { %1442 = vsyncadd [#allocation3], 4294964992  ;;  %vm94_vm0 = vcmask 1043456   ;;  %v34_v0 = vld [vmem:[%s2037_s1] sm:$0xff]  ;;  %v35_v1 = vld [vmem:[%s2037_s1 + $0x8] sm:$0xff]  ;;  %v2058_v2 = vmov 0.0  }
   0xe   :  { %288 = vmatprep.mubr.f32.mxu1 %v2058_v2  ;;  %171 = vmatprep.mubr.f32.mxu0 %v2058_v2  ;;  %v33_v3 = vld [vmem:[%s2036_s0 + $0x28] sm:$0xf]  ;;  %v32_v4 = vld [vmem:[%s2036_s0 + $0x20] sm:$0xf]  ;;  %v31_v5 = vld [vmem:[%s2036_s0 + $0x18] sm:$0xff]  ;;  %vm87_vm1 = vcmask 162816  }
   0xf   :  { %55 = vxpose.xlu0.b32.start [1/3] (short) (narrow) %v34_v0, 16  ;;  %v99_v6 = vsel %vm94_vm0, %v33_v3, 0  ;;  %v96_v7 = vsel %vm94_vm0, %v32_v4, 0  ;;  %v1487_v8 = vand.u32 4294901760, %v31_v5  ;;  %v30_v9 = vld [vmem:[%s2036_s0 + $0x10] sm:$0xff]  ;;  %v29_v10 = vld [vmem:[%s2036_s0 + $0x8] sm:$0xff] }
  0x10   :  { %v28_v11 = vld [vmem:[%s2036_s0] sm:$0xff]  ;;  %v1498_v12 = vand.u32 4294901760, %v99_v6  ;;  %v1500_v13 = vand.u32 4294901760, %v96_v7  ;;  %v1502_v14 = vand.u32 4294901760, %v30_v9  ;;  %v1504_v15 = vand.u32 4294901760, %v29_v10  ;;  %v52_v48 = vld [vmem:[#allocation2 + $0x78] sm:$0xff] }
  0x11   :  { %v1507_v16 = vsub.f32 %v31_v5, %v1487_v8  ;;  %v1509_v17 = vand.u32 4294901760, %v28_v11  ;;  %v36_v22 = vld [vmem:[%s2037_s1 + $0x10] sm:$0xf]  ;;  %v1566_v53 = vand.u32 4294901760, %v52_v48  ;;  %v50_v0 = vld [vmem:[#allocation2 + $0x68] sm:$0xff]  ;;  %v49_v4 = vld [vmem:[#allocation2 + $0x60] sm:$0xff] }
  0x12   :  { %v1512_v18 = vsub.f32 %v99_v6, %v1498_v12  ;;  %v1515_v19 = vsub.f32 %v96_v7, %v1500_v13  ;;  %v1518_v20 = vsub.f32 %v30_v9, %v1502_v14  ;;  %v1521_v21 = vsub.f32 %v29_v10, %v1504_v15  ;;  %128 = vmatprep.subr.mxu0 %v1498_v12  ;;  %v51_v62 = vld [vmem:[#allocation2 + $0x70] sm:$0xff] }
  0x13   :  { %56 = vxpose.xlu0.b32.cont [2/3] (short) (narrow) %v35_v1, 16  ;;  %v234_v23 = vand.u32 4294901760, %v1507_v16  ;;  %v1528_v24 = vsub.f32 %v28_v11, %v1509_v17  ;;  %130 = vmatpush1.msra.mxu0 %v1500_v13  ;;  %v1572_v57 = vsub.f32 %v52_v48, %v1566_v53  ;;  %v1613_v63 = vand.u32 4294901760, %v51_v62 }
  0x14   :  { %v222_v25 = vand.u32 4294901760, %v1512_v18  ;;  %v228_v26 = vand.u32 4294901760, %v1515_v19  ;;  %v240_v27 = vand.u32 4294901760, %v1518_v20  ;;  %v246_v28 = vand.u32 4294901760, %v1521_v21  ;;  %132 = vmatprep.subr.mxu0 %v1487_v8 }
  0x15   :  { %v235_v29 = vsub.f32 %v1507_v16, %v234_v23  ;;  %v252_v30 = vand.u32 4294901760, %v1528_v24  ;;  %134 = vmatpush1.msra.mxu0 %v1502_v14  ;;  %v2057_v59 = vand.u32 4294901760, %v1572_v57  ;;  %v1616_v1 = vsub.f32 %v51_v62, %v1613_v63 }
  0x16   :  { %v223_v31 = vsub.f32 %v1512_v18, %v222_v25  ;;  %v229_v32 = vsub.f32 %v1515_v19, %v228_v26  ;;  %v241_v33 = vsub.f32 %v1518_v20, %v240_v27  ;;  %v247_v34 = vsub.f32 %v1521_v21, %v246_v28  ;;  %136 = vmatprep.subr.mxu0 %v1504_v15 }
  0x17   :  { %57 = vxpose.xlu0.b32.end [3/3] (short) (narrow) %v36_v22, 16  ;;  %v253_v35 = vsub.f32 %v1528_v24, %v252_v30  ;;  %v236_v38 = vand.u32 4294901760, %v235_v29  ;;  %138 = vmatpush1.msra.mxu0 %v1509_v17  ;;  %v791_v60 = vsub.f32 %v1572_v57, %v2057_v59  ;;  %v1618_v3 = vand.u32 4294901760, %v50_v0 }
  0x18   :  { %v224_v36 = vand.u32 4294901760, %v223_v31  ;;  %v230_v37 = vand.u32 4294901760, %v229_v32  ;;  %v242_v39 = vand.u32 4294901760, %v241_v33  ;;  %v248_v40 = vand.u32 4294901760, %v247_v34  ;;  %331 = vmatprep.subr.mxu0 %v1512_v18  ;;  %v44_v31 = vld [vmem:[#allocation2 + $0x38] sm:$0xff] }
  0x19   :  { %v254_v41 = vand.u32 4294901760, %v253_v35  ;;  %v792_v61 = vand.u32 4294901760, %v791_v60  ;;  %v2056_v5 = vand.u32 4294901760, %v1616_v1  ;;  %v1624_v6 = vsub.f32 %v50_v0, %v1618_v3 }
  0x1a   :  { %225 = vmatprep.subr.mxu1 %v224_v36  ;;  %v1626_v7 = vand.u32 4294901760, %v49_v4  ;;  %v1679_v35 = vand.u32 4294901760, %v44_v31  ;;  %vm667_vm2 = vcmask 130048  }
  0x1b   :  { %231 = vmatpush1.msra.mxu1 %v230_v37  ;;  %v798_v9 = vsub.f32 %v1616_v1, %v2056_v5  ;;  %v2055_v10 = vand.u32 4294901760, %v1624_v6  ;;  %v43_v37 = vld [vmem:[#allocation2 + $0x30] sm:$0xff] }
  0x1c   :  { %237 = vmatprep.subr.mxu1 %v236_v38  ;;  %v1635_v11 = vsub.f32 %v49_v4, %v1626_v7  ;;  %v39_v4 = vld [vmem:[#allocation2 + $0x10] sm:$0xff] }
  0x1d   :  { %243 = vmatpush1.msra.mxu1 %v242_v39 }
  0x1e   :  { %249 = vmatprep.subr.mxu1 %v248_v40  ;;  %v1692_v40 = vsub.f32 %v44_v31, %v1679_v35  ;;  %v37_v31 = vld [vmem:[#allocation2] sm:$0xff] }
  0x1f   :  { %255 = vmatpush1.msra.mxu1 %v254_v41  ;;  %v1694_v41 = vand.u32 4294901760, %v43_v37 }
  0x20   :  { %423 = vmatprep.subr.mxu1 %v1498_v12 }
  0x8b   :  { %v71_v42 = vpop.trf.xlu0 }
  0x8c   :  { %v89_v43 = vsel %vm87_vm1, %v71_v42, 0 }
  0x8d   :  { %v172_v44 = vand.u32 4294901760, %v89_v43 }
  0x8f   :  { %v173_v45 = vsub.f32 %v89_v43, %v172_v44  ;;  %v72_v46 = vpop.trf.xlu0  ;;  %290 = vmatmul.mubr.f32.vlgmr.msra.gmra.mxu1 %v172_v44  ;;  %v42_v43 = vld [vmem:[#allocation2 + $0x28] sm:$0xff] }
  0x90   :  { %v92_v47 = vsel %vm87_vm1, %v72_v46, 0  ;;  %295 = vmatprep.mubr.f32.mxu1 %v2058_v2  ;;  %425 = vmatpush1.msra.mxu1 %v1500_v13  ;;  %v2049_v46 = vand.u32 4294901760, %v1692_v40  ;;  %v1707_v48 = vand.u32 4294901760, %v42_v43 }
  0x91   :  { %v174_v49 = vand.u32 4294901760, %v173_v45  ;;  %v183_v50 = vand.u32 4294901760, %v92_v47  ;;  %427 = vmatprep.subr.mxu1 %v1487_v8 }
  0x92   :  { %429 = vmatpush1.msra.mxu1 %v1502_v14 }
  0x93   :  { %v184_v51 = vsub.f32 %v92_v47, %v183_v50  ;;  %297 = vmatmul.mubr.f32.gmra.mxu1 %v183_v50  ;;  %431 = vmatprep.subr.mxu1 %v1504_v15  ;;  %v175_v52 = vsub.f32 %v173_v45, %v174_v49  ;;  %v1704_v47 = vsub.f32 %v43_v37, %v1694_v41 }
  0x94   :  { %433 = vmatpush1.msra.mxu1 %v1509_v17  ;;  %466 = vmatprep.mubr.f32.mxu1 %v2058_v2 }
  0x95   :  { %v185_v54 = vand.u32 4294901760, %v184_v51  ;;  %v176_v55 = vand.u32 4294901760, %v175_v52  ;;  %609 = vmatprep.subr.mxu1 %v1498_v12  ;;  %v2048_v52 = vand.u32 4294901760, %v1704_v47 }
  0x97   :  { %177 = vmatmul.mubr.f32.vlgmr.msra.gmra.mxu0 %v176_v55  ;;  %470 = vmatmul.mubr.f32.vlgmr.msra.gmra.mxu1 %v174_v49  ;;  %v186_v56 = vsub.f32 %v184_v51, %v185_v54  ;;  %v41_v49 = vld [vmem:[#allocation2 + $0x20] sm:$0xff]  ;;  %v1719_v55 = vsub.f32 %v42_v43, %v1707_v48  ;;  %v854_v60 = vsub.f32 %v1704_v47, %v2048_v52  ;;  %v54_v43 = vld [vmem:[#allocation2 + $0x88] sm:$0xff] }
  0x98   :  { %334 = vmatpush1.msra.mxu0 %v1515_v19  ;;  %182 = vmatprep.mubr.f32.mxu0 %v2058_v2  ;;  %v46_v19 = vld [vmem:[#allocation2 + $0x48] sm:$0xff] }
  0x99   :  { %337 = vmatprep.subr.mxu0 %v1507_v16  ;;  %475 = vmatprep.mubr.f32.mxu1 %v2058_v2  ;;  %v187_v58 = vand.u32 4294901760, %v186_v56  ;;  %v2054_v16 = vand.u32 4294901760, %v1635_v11  ;;  %v40_v56 = vld [vmem:[#allocation2 + $0x18] sm:$0xff]  ;;  %v2047_v0 = vand.u32 4294901760, %v1719_v55 }
  0x9a   :  { %340 = vmatpush1.msra.mxu0 %v1518_v20  ;;  %611 = vmatpush1.msra.mxu1 %v1500_v13  ;;  %v47_v13 = vld [vmem:[#allocation2 + $0x50] sm:$0xff]  ;;  %v1729_v62 = vand.u32 4294901760, %v40_v56 }
  0x9b   :  { %188 = vmatmul.mubr.f32.gmra.mxu0 %v187_v58  ;;  %479 = vmatmul.mubr.f32.gmra.mxu1 %v185_v54  ;;  %v1649_v18 = vand.u32 4294901760, %v47_v13  ;;  %v1715_v54 = vand.u32 4294901760, %v41_v49 }
  0x9c   :  { %613 = vmatprep.subr.mxu1 %v1487_v8  ;;  %343 = vmatprep.subr.mxu0 %v1521_v21  ;;  %v48_v8 = vld [vmem:[#allocation2 + $0x58] sm:$0xff]  ;;  %v812_v21 = vsub.f32 %v1635_v11, %v2054_v16 }
  0x9d   :  { %615 = vmatpush1.msra.mxu1 %v1502_v14  ;;  %346 = vmatpush1.msra.mxu0 %v1528_v24  ;;  %v1637_v12 = vand.u32 4294901760, %v48_v8  ;;  %v799_v14 = vand.u32 4294901760, %v798_v9  ;;  %v1660_v24 = vsub.f32 %v47_v13, %v1649_v18  ;;  %v1737_v13 = vsub.f32 %v40_v56, %v1729_v62  ;;  %v53_v56 = vld [vmem:[#allocation2 + $0x80] sm:$0xff] }
  0x9e   :  { %617 = vmatprep.subr.mxu1 %v1504_v15  ;;  %379 = vmatprep.mubr.f32.mxu0 %v2058_v2  ;;  %v805_v15 = vsub.f32 %v1624_v6, %v2055_v10 }
  0x9f   :  { %514 = vmatprep.subr.mxu0 %v222_v25  ;;  %619 = vmatpush1.msra.mxu1 %v1509_v17  ;;  %v1646_v17 = vsub.f32 %v48_v8, %v1637_v12  ;;  %v45_v25 = vld [vmem:[#allocation2 + $0x40] sm:$0xff]  ;;  %v855_v8 = vand.u32 4294901760, %v854_v60 }
  0xa0   :  { %652 = vmatprep.mubr.f32.mxu1 %v2058_v2  ;;  %382 = vmatmul.mubr.f32.vlgmr.msra.gmra.mxu0 %v173_v45  ;;  %v806_v20 = vand.u32 4294901760, %v805_v15  ;;  %v1669_v29 = vand.u32 4294901760, %v45_v25  ;;  %v861_v15 = vsub.f32 %v1719_v55, %v2047_v0 }
  0xa1   :  { %518 = vmatpush1.msra.mxu0 %v228_v26  ;;  %654 = vmatmul.mubr.f32.vlgmr.msra.gmra.mxu1 %v172_v44  ;;  %v2053_v22 = vand.u32 4294901760, %v1646_v17  ;;  %v813_v26 = vand.u32 4294901760, %v812_v21  ;;  %v2045_v21 = vand.u32 4294901760, %v1737_v13 }
  0xa2   :  { %522 = vmatprep.subr.mxu0 %v234_v23  ;;  %387 = vmatprep.mubr.f32.mxu0 %v2058_v2  ;;  %v1656_v23 = vand.u32 4294901760, %v46_v19  ;;  %v1677_v34 = vsub.f32 %v45_v25, %v1669_v29 }
  0xa3   :  { %526 = vmatpush1.msra.mxu0 %v240_v27  ;;  %659 = vmatprep.mubr.f32.mxu1 %v2058_v2  ;;  %v819_v27 = vsub.f32 %v1646_v17, %v2053_v22 }
  0xa4   :  { %390 = vmatmul.mubr.f32.gmra.mxu0 %v184_v51  ;;  %530 = vmatprep.subr.mxu0 %v246_v28  ;;  %v1667_v28 = vsub.f32 %v46_v19, %v1656_v23  ;;  %v2050_v39 = vand.u32 4294901760, %v1677_v34  ;;  %v847_v51 = vsub.f32 %v1692_v40, %v2049_v46  ;;  %v38_v19 = vld [vmem:[#allocation2 + $0x8] sm:$0xff] }
  0xa5   :  { %661 = vmatmul.mubr.f32.gmra.mxu1 %v183_v50  ;;  %534 = vmatpush1.msra.mxu0 %v252_v30  ;;  %v2052_v30 = vand.u32 4294901760, %v1660_v24  ;;  %v820_v32 = vand.u32 4294901760, %v819_v27  ;;  %v862_v27 = vand.u32 4294901760, %v861_v15 }
  0xa6   :  { %567 = vmatprep.mubr.f32.mxu0 %v2058_v2  ;;  %787 = vmatprep.subr.mxu1 %v2058_v2  ;;  %v2051_v33 = vand.u32 4294901760, %v1667_v28  ;;  %v840_v45 = vsub.f32 %v1677_v34, %v2050_v39  ;;  %v848_v58 = vand.u32 4294901760, %v847_v51 }
  0xa7   :  { %793 = vmatpush1.msra.mxu1 %v792_v61  ;;  %674 = vmatprep.subr.mxu0 %v2058_v2  ;;  %v826_v36 = vsub.f32 %v1660_v24, %v2052_v30  ;;  %v1727_v61 = vsub.f32 %v41_v49, %v1715_v54 }
  0xa8   :  { %569 = vmatmul.mubr.f32.vlgmr.msra.gmra.mxu0 %v172_v44  ;;  %794 = vmatprep.subr.mxu1 %v2058_v2  ;;  %v833_v38 = vsub.f32 %v1667_v28, %v2051_v33 }
  0xa9   :  { %574 = vmatprep.mubr.f32.mxu0 %v2058_v2  ;;  %676 = vmatpush1.msra.mxu0 %v1566_v53  ;;  %v827_v42 = vand.u32 4294901760, %v826_v36  ;;  %v2046_v9 = vand.u32 4294901760, %v1727_v61  ;;  %v875_v36 = vsub.f32 %v1737_v13, %v2045_v21 }
  0xaa   :  { %677 = vmatprep.subr.mxu0 %v2058_v2  ;;  %800 = vmatpush1.msra.mxu1 %v799_v14  ;;  %v834_v44 = vand.u32 4294901760, %v833_v38  ;;  %v1739_v14 = vand.u32 4294901760, %v39_v4 }
  0xab   :  { %679 = vmatpush1.msra.mxu0 %v1613_v63  ;;  %801 = vmatprep.subr.mxu1 %v2058_v2 }
  0xac   :  { %576 = vmatmul.mubr.f32.gmra.mxu0 %v183_v50  ;;  %680 = vmatprep.subr.mxu0 %v2058_v2  ;;  %v841_v50 = vand.u32 4294901760, %v840_v45  ;;  %v1752_v25 = vsub.f32 %v39_v4, %v1739_v14 }
  0xad   :  { %682 = vmatpush1.msra.mxu0 %v1618_v3  ;;  %807 = vmatpush1.msra.mxu1 %v806_v20  ;;  %v868_v20 = vsub.f32 %v1727_v61, %v2046_v9 }
  0xae   :  { %683 = vmatprep.subr.mxu0 %v2058_v2  ;;  %808 = vmatprep.subr.mxu1 %v2058_v2  ;;  %v2043_v37 = vand.u32 4294901760, %v1752_v25 }
  0xaf   :  { %685 = vmatpush1.msra.mxu0 %v1626_v7  ;;  %814 = vmatpush1.msra.mxu1 %v813_v26  ;;  %v1754_v26 = vand.u32 4294901760, %v38_v19 }
  0xb0   :  { %686 = vmatprep.subr.mxu0 %v2058_v2  ;;  %815 = vmatprep.subr.mxu1 %v2058_v2  ;;  %v882_v45 = vsub.f32 %v1752_v25, %v2043_v37 }
  0xb1   :  { %688 = vmatpush1.msra.mxu0 %v1637_v12  ;;  %821 = vmatpush1.msra.mxu1 %v820_v32  ;;  %v869_v32 = vand.u32 4294901760, %v868_v20  ;;  %v1764_v38 = vsub.f32 %v38_v19, %v1754_v26 }
  0xb2   :  { %689 = vmatprep.subr.mxu0 %v2058_v2  ;;  %822 = vmatprep.subr.mxu1 %v2058_v2 }
  0xb3   :  { %691 = vmatpush1.msra.mxu0 %v1649_v18  ;;  %828 = vmatpush1.msra.mxu1 %v827_v42  ;;  %2070 = vst [vmem:[#allocation5_spill] sm:$0xff] %v1764_v38  ;;  %v1767_v42 = vand.u32 4294901760, %v37_v31  ;;  %v2042_v49 = vand.u32 4294901760, %v1764_v38 }
  0xb4   :  { %692 = vmatprep.subr.mxu0 %v2058_v2  ;;  %829 = vmatprep.subr.mxu1 %v2058_v2 }
  0xb5   :  { %694 = vmatpush1.msra.mxu0 %v1656_v23  ;;  %835 = vmatpush1.msra.mxu1 %v834_v44  ;;  %v876_v44 = vand.u32 4294901760, %v875_v36  ;;  %v1779_v51 = vsub.f32 %v37_v31, %v1767_v42  ;;  %v889_v60 = vsub.f32 %v1764_v38, %v2042_v49 }
  0xb6   :  { %695 = vmatprep.subr.mxu0 %v2058_v2  ;;  %836 = vmatprep.subr.mxu1 %v2058_v2 }
  0xb7   :  { %697 = vmatpush1.msra.mxu0 %v1669_v29  ;;  %842 = vmatpush1.msra.mxu1 %v841_v50  ;;  %v1775_v50 = vand.u32 4294901760, %v54_v43  ;;  %2071 = vst [vmem:[#allocation6_spill] sm:$0xff] %v1779_v51  ;;  %v2041_v15 = vand.u32 4294901760, %v1779_v51  ;;  %v890_v19 = vand.u32 4294901760, %v889_v60 }
  0xb8   :  { %698 = vmatprep.subr.mxu0 %v2058_v2  ;;  %843 = vmatprep.subr.mxu1 %v2058_v2 }
  0xb9   :  { %700 = vmatpush1.msra.mxu0 %v1679_v35  ;;  %849 = vmatpush1.msra.mxu1 %v848_v58  ;;  %v883_v58 = vand.u32 4294901760, %v882_v45  ;;  %v1787_v4 = vsub.f32 %v54_v43, %v1775_v50  ;;  %v896_v31 = vsub.f32 %v1779_v51, %v2041_v15 }
  0xba   :  { %701 = vmatprep.subr.mxu0 %v2058_v2  ;;  %850 = vmatprep.subr.mxu1 %v2058_v2 }
  0xbb   :  { %703 = vmatpush1.msra.mxu0 %v1694_v41  ;;  %856 = vmatpush1.msra.mxu1 %v855_v8  ;;  %2072 = vst [vmem:[#allocation7_spill] sm:$0xff] %v1787_v4  ;;  %v1789_v8 = vand.u32 4294901760, %v53_v56  ;;  %v2040_v20 = vand.u32 4294901760, %v1787_v4  ;;  %v897_v43 = vand.u32 4294901760, %v896_v31 }
  0xbc   :  { %704 = vmatprep.subr.mxu0 %v2058_v2  ;;  %857 = vmatprep.subr.mxu1 %v2058_v2 }
  0xbd   :  { %706 = vmatpush1.msra.mxu0 %v1707_v48  ;;  %863 = vmatpush1.msra.mxu1 %v862_v27  ;;  %2073 = vst [vmem:[#allocation8_spill] sm:$0xff] %v1789_v8  ;;  %v1797_v27 = vsub.f32 %v53_v56, %v1789_v8 }
  0xbe   :  { %707 = vmatprep.subr.mxu0 %v2058_v2  ;;  %864 = vmatprep.subr.mxu1 %v2058_v2 }
  0xbf   :  { %709 = vmatpush1.msra.mxu0 %v1715_v54  ;;  %870 = vmatpush1.msra.mxu1 %v869_v32  ;;  %2074 = vst [vmem:[#allocation9_spill] sm:$0xff] %v1797_v27  ;;  %v931_v32 = vsub.f32 %v1787_v4, %v2040_v20  ;;  %v2044_v36 = vand.u32 4294901760, %v1797_v27 }
  0xc0   :  { %710 = vmatprep.subr.mxu0 %v2058_v2  ;;  %871 = vmatprep.subr.mxu1 %v2058_v2 }
  0xc1   :  { %712 = vmatpush1.msra.mxu0 %v1729_v62  ;;  %877 = vmatpush1.msra.mxu1 %v876_v44  ;;  %v932_v44 = vand.u32 4294901760, %v931_v32  ;;  %v938_v45 = vsub.f32 %v1797_v27, %v2044_v36 }
  0xc2   :  { %713 = vmatprep.subr.mxu0 %v2058_v2  ;;  %878 = vmatprep.subr.mxu1 %v2058_v2 }
  0xc3   :  { %715 = vmatpush1.msra.mxu0 %v1739_v14  ;;  %884 = vmatpush1.msra.mxu1 %v883_v58  ;;  %v939_v56 = vand.u32 4294901760, %v938_v45 }
  0xc4   :  { %716 = vmatprep.subr.mxu0 %v2058_v2  ;;  %885 = vmatprep.subr.mxu1 %v2058_v2 }
  0xc5   :  { %718 = vmatpush1.msra.mxu0 %v1754_v26  ;;  %891 = vmatpush1.msra.mxu1 %v890_v19 }
  0xc6   :  { %719 = vmatprep.subr.mxu0 %v2058_v2  ;;  %892 = vmatprep.subr.mxu1 %v2058_v2 }
  0xc7   :  { %721 = vmatpush1.msra.mxu0 %v1767_v42  ;;  %898 = vmatpush1.msra.mxu1 %v897_v43 }
  0xc8   :  { %750 = vmatprep.subr.mxu0 %v2058_v2  ;;  %927 = vmatprep.subr.mxu1 %v2058_v2 }
  0xc9   :  { %752 = vmatpush2.msra.mxu0 %v1775_v50  ;;  %933 = vmatpush2.msra.mxu1 %v932_v44 }
  0xca   :  { %753 = vmatprep.subr.mxu0 %v2058_v2  ;;  %934 = vmatprep.subr.mxu1 %v2058_v2 }
  0xcb   :  { %755 = vmatpush2.msra.mxu0 %v1789_v8  ;;  %940 = vmatpush2.msra.mxu1 %v939_v56 }
  0xcc   :  { %956 = vmatprep.subr.mxu0 %v2058_v2  ;;  %1075 = vmatprep.subr.mxu1 %v2058_v2 }
 0x14f   :  { %v291_v58 = vpop.f32.mrf.mxu1 }
 0x151   :  { %v293_v60 = vpop.f32.mrf.mxu1 }
 0x153   :  { %v298_v19 = vpop.f32.mrf.mxu1 }
 0x155   :  { %v300_v31 = vpop.f32.mrf.mxu1 }
 0x157   :  { %v178_v20 = vpop.f32.mrf.mxu0  ;;  %v471_v32 = vpop.f32.mrf.mxu1 }
 0x158   :  { %v292_v45 = vadd.f32 %v291_v58, %v178_v20 }
 0x159   :  { %v180_v15 = vpop.f32.mrf.mxu0  ;;  %v473_v49 = vpop.f32.mrf.mxu1 }
 0x15a   :  { %v294_v0 = vadd.f32 %v293_v60, %v180_v15 }
 0x15b   :  { %v189_v37 = vpop.f32.mrf.mxu0  ;;  %v480_v36 = vpop.f32.mrf.mxu1 }
 0x15c   :  { %v299_v39 = vadd.f32 %v298_v19, %v189_v37 }
 0x15d   :  { %v191_v43 = vpop.f32.mrf.mxu0  ;;  %v482_v21 = vpop.f32.mrf.mxu1 }
 0x15e   :  { %v301_v22 = vadd.f32 %v300_v31, %v191_v43 }
 0x160   :  { %v383_v9 = vpop.f32.mrf.mxu0 }
 0x161   :  { %v384_v52 = vadd.f32 %v383_v9, %v292_v45  ;;  %v655_v56 = vpop.f32.mrf.mxu1 }
 0x162   :  { %v385_v44 = vpop.f32.mrf.mxu0 }
 0x163   :  { %v386_v33 = vadd.f32 %v385_v44, %v294_v0  ;;  %v472_v10 = vadd.f32 %v471_v32, %v384_v52  ;;  %v657_v5 = vpop.f32.mrf.mxu1 }
 0x164   :  { %v391_v46 = vpop.f32.mrf.mxu0 }
 0x165   :  { %v392_v16 = vadd.f32 %v391_v46, %v299_v39  ;;  %v474_v4 = vadd.f32 %v473_v49, %v386_v33  ;;  %v662_v58 = vpop.f32.mrf.mxu1 }
 0x166   :  { %v393_v30 = vpop.f32.mrf.mxu0 }
 0x167   :  { %v394_v2 = vadd.f32 %v393_v30, %v301_v22  ;;  %v481_v20 = vadd.f32 %v480_v36, %v392_v16  ;;  %v664_v30 = vpop.f32.mrf.mxu1 }
 0x168   :  { %v570_v59 = vpop.f32.mrf.mxu0 }
 0x169   :  { %v571_v27 = vadd.f32 %v570_v59, %v472_v10  ;;  %v483_v60 = vadd.f32 %v482_v21, %v394_v2 }
 0x16a   :  { %v572_v51 = vpop.f32.mrf.mxu0 }
 0x16b   :  { %v656_v38 = vadd.f32 %v655_v56, %v571_v27  ;;  %v573_v8 = vadd.f32 %v572_v51, %v474_v4  ;;  %v2075_v4 = vmov 0.0  }
 0x16c   :  { %v577_v9 = vpop.f32.mrf.mxu0 }
 0x16d   :  { %v1817_v15 = vand.u32 4294901760, %v656_v38  ;;  %v658_v37 = vadd.f32 %v657_v5, %v573_v8  ;;  %v578_v0 = vadd.f32 %v577_v9, %v481_v20  ;;  %v2077_v9 = vld [vmem:[#allocation5_spill] sm:$0xff] }
 0x16e   :  { %v579_v19 = vpop.f32.mrf.mxu0 }
 0x16f   :  { %v1820_v39 = vsub.f32 %v656_v38, %v1817_v15  ;;  %v669_v22 = vsel %vm667_vm2, %v658_v37, 0  ;;  %v663_v59 = vadd.f32 %v662_v58, %v578_v0  ;;  %v580_v10 = vadd.f32 %v579_v19, %v483_v60  ;;  %v2076_v58 = vld [vmem:[#allocation8_spill] sm:$0xff]  ;;  %v2078_v37 = vld [vmem:[#allocation6_spill] sm:$0xff]  ;;  %v2079_v0 = vld [vmem:[#allocation7_spill] sm:$0xff] }
 0x170   :  { %v1823_v33 = vand.u32 4294901760, %v669_v22 }
 0x171   :  { %v764_v16 = vand.u32 4294901760, %v1820_v39  ;;  %v1826_v46 = vand.u32 4294901760, %v663_v59  ;;  %v665_v52 = vadd.f32 %v664_v30, %v580_v10 }
 0x172   :  { %v757_v5 = vsub.f32 %v669_v22, %v1823_v33  ;;  %942 = vmatprep.mubr.f32.mxu1 %v1823_v33 }
 0x173   :  { %v1831_v2 = vsub.f32 %v663_v59, %v1826_v46  ;;  %v672_v21 = vsel %vm667_vm2, %v665_v52, 0  ;;  %944 = vmatmul.mubr.f32.vlgmr.msra.gmra.mxu1 %v1817_v15  ;;  %v765_v51 = vsub.f32 %v1820_v39, %v764_v16 }
 0x174   :  { %v1835_v38 = vand.u32 4294901760, %v672_v21  ;;  %1077 = vmatpush1.msra.mxu1 %v1566_v53  ;;  %v758_v49 = vand.u32 4294901760, %v757_v5 }
 0x175   :  { %1078 = vmatprep.subr.mxu1 %v2075_v4  ;;  %v779_v36 = vand.u32 4294901760, %v1831_v2  ;;  %v766_v43 = vand.u32 4294901760, %v765_v51 }
 0x176   :  { %v1843_v8 = vsub.f32 %v672_v21, %v1835_v38  ;;  %1080 = vmatpush1.msra.mxu1 %v1613_v63  ;;  %949 = vmatprep.mubr.f32.mxu1 %v1835_v38  ;;  %v759_v27 = vsub.f32 %v757_v5, %v758_v49 }
 0x177   :  { %1081 = vmatprep.subr.mxu1 %v2075_v4  ;;  %951 = vmatmul.mubr.f32.gmra.mxu1 %v1826_v46  ;;  %v780_v44 = vsub.f32 %v1831_v2, %v779_v36 }
 0x178   :  { %1083 = vmatpush1.msra.mxu1 %v1618_v3  ;;  %1160 = vmatprep.mubr.f32.mxu1 %v758_v49  ;;  %v760_v31 = vand.u32 4294901760, %v759_v27  ;;  %v773_v32 = vand.u32 4294901760, %v1843_v8 }
 0x179   :  { %1084 = vmatprep.subr.mxu1 %v2075_v4  ;;  %v781_v20 = vand.u32 4294901760, %v780_v44 }
 0x17a   :  { %1086 = vmatpush1.msra.mxu1 %v1626_v7  ;;  %761 = vmatprep.mubr.f32.mxu0 %v760_v31  ;;  %v774_v45 = vsub.f32 %v1843_v8, %v773_v32 }
 0x17b   :  { %1087 = vmatprep.subr.mxu1 %v2075_v4  ;;  %767 = vmatmul.mubr.f32.vlgmr.msra.gmra.mxu0 %v766_v43 }
 0x17c   :  { %959 = vmatpush1.msra.mxu0 %v1572_v57  ;;  %1089 = vmatpush1.msra.mxu1 %v1637_v12  ;;  %v775_v56 = vand.u32 4294901760, %v774_v45 }
 0x17d   :  { %960 = vmatprep.subr.mxu0 %v2075_v4  ;;  %1090 = vmatprep.subr.mxu1 %v2075_v4 }
 0x17e   :  { %963 = vmatpush1.msra.mxu0 %v1616_v1  ;;  %1092 = vmatpush1.msra.mxu1 %v1649_v18 }
 0x17f   :  { %776 = vmatprep.mubr.f32.mxu0 %v775_v56  ;;  %964 = vmatprep.subr.mxu0 %v2075_v4 }
 0x180   :  { %1093 = vmatprep.subr.mxu1 %v2075_v4  ;;  %782 = vmatmul.mubr.f32.gmra.mxu0 %v781_v20 }
 0x181   :  { %967 = vmatpush1.msra.mxu0 %v1624_v6  ;;  %1095 = vmatpush1.msra.mxu1 %v1656_v23 }
 0x182   :  { %968 = vmatprep.subr.mxu0 %v2075_v4  ;;  %1058 = vmatprep.mubr.f32.mxu0 %v757_v5 }
 0x183   :  { %1096 = vmatprep.subr.mxu1 %v2075_v4  ;;  %971 = vmatpush1.msra.mxu0 %v1635_v11 }
 0x184   :  { %1098 = vmatpush1.msra.mxu1 %v1669_v29  ;;  %972 = vmatprep.subr.mxu0 %v2075_v4 }
 0x185   :  { %1099 = vmatprep.subr.mxu1 %v2075_v4  ;;  %975 = vmatpush1.msra.mxu0 %v1646_v17 }
 0x186   :  { %1101 = vmatpush1.msra.mxu1 %v1679_v35  ;;  %976 = vmatprep.subr.mxu0 %v2075_v4 }
 0x187   :  { %1102 = vmatprep.subr.mxu1 %v2075_v4  ;;  %979 = vmatpush1.msra.mxu0 %v1660_v24 }
 0x188   :  { %1104 = vmatpush1.msra.mxu1 %v1694_v41  ;;  %980 = vmatprep.subr.mxu0 %v2075_v4 }
 0x189   :  { %1105 = vmatprep.subr.mxu1 %v2075_v4  ;;  %983 = vmatpush1.msra.mxu0 %v1667_v28 }
 0x18a   :  { %1107 = vmatpush1.msra.mxu1 %v1707_v48  ;;  %984 = vmatprep.subr.mxu0 %v2075_v4 }
 0x18b   :  { %1108 = vmatprep.subr.mxu1 %v2075_v4  ;;  %987 = vmatpush1.msra.mxu0 %v1677_v34 }
 0x18c   :  { %1110 = vmatpush1.msra.mxu1 %v1715_v54  ;;  %988 = vmatprep.subr.mxu0 %v2075_v4 }
 0x18d   :  { %1111 = vmatprep.subr.mxu1 %v2075_v4  ;;  %991 = vmatpush1.msra.mxu0 %v1692_v40 }
 0x18e   :  { %1113 = vmatpush1.msra.mxu1 %v1729_v62  ;;  %992 = vmatprep.subr.mxu0 %v2075_v4 }
 0x18f   :  { %1114 = vmatprep.subr.mxu1 %v2075_v4  ;;  %995 = vmatpush1.msra.mxu0 %v1704_v47 }
 0x190   :  { %1116 = vmatpush1.msra.mxu1 %v1739_v14  ;;  %996 = vmatprep.subr.mxu0 %v2075_v4 }
 0x191   :  { %1117 = vmatprep.subr.mxu1 %v2075_v4  ;;  %999 = vmatpush1.msra.mxu0 %v1719_v55 }
 0x192   :  { %1119 = vmatpush1.msra.mxu1 %v1754_v26  ;;  %1000 = vmatprep.subr.mxu0 %v2075_v4 }
 0x193   :  { %1120 = vmatprep.subr.mxu1 %v2075_v4  ;;  %1003 = vmatpush1.msra.mxu0 %v1727_v61 }
 0x194   :  { %1122 = vmatpush1.msra.mxu1 %v1767_v42  ;;  %1004 = vmatprep.subr.mxu0 %v2075_v4 }
 0x195   :  { %1151 = vmatprep.subr.mxu1 %v2075_v4  ;;  %1007 = vmatpush1.msra.mxu0 %v1737_v13 }
 0x196   :  { %1153 = vmatpush2.msra.mxu1 %v1775_v50  ;;  %1008 = vmatprep.subr.mxu0 %v2075_v4 }
 0x197   :  { %1154 = vmatprep.subr.mxu1 %v2075_v4  ;;  %1011 = vmatpush1.msra.mxu0 %v1752_v25 }
 0x198   :  { %1156 = vmatpush2.msra.mxu1 %v2076_v58  ;;  %1012 = vmatprep.subr.mxu0 %v2075_v4 }
 0x199   :  { %1164 = vmatmul.mubr.f32.vlgmr.msra.gmra.mxu1 %v764_v16  ;;  %1313 = vmatprep.subr.mxu1 %v2075_v4 }
 0x19a   :  { %1015 = vmatpush1.msra.mxu0 %v2077_v9  ;;  %1171 = vmatprep.mubr.f32.mxu1 %v773_v32 }
 0x19b   :  { %1315 = vmatpush1.msra.mxu1 %v1566_v53  ;;  %1016 = vmatprep.subr.mxu0 %v2075_v4  ;;  %v2080_v53 = vld [vmem:[#allocation9_spill] sm:$0xff] }
 0x19c   :  { %1316 = vmatprep.subr.mxu1 %v2075_v4  ;;  %1019 = vmatpush1.msra.mxu0 %v2078_v37 }
 0x19d   :  { %1318 = vmatpush1.msra.mxu1 %v1613_v63  ;;  %1048 = vmatprep.subr.mxu0 %v2075_v4  ;;  %v2081_v63 = vand.u32 4294901760, %v1572_v57  ;;  %v2083_v57 = vand.u32 4294901760, %v1624_v6  ;;  %v2085_v6 = vand.u32 4294901760, %v1646_v17  ;;  %v2089_v17 = vand.u32 4294901760, %v1692_v40 }
 0x19e   :  { %1175 = vmatmul.mubr.f32.gmra.mxu1 %v779_v36  ;;  %1319 = vmatprep.subr.mxu1 %v2075_v4  ;;  %v2097_v40 = vand.u32 4294901760, %v2079_v0 }
 0x19f   :  { %1051 = vmatpush2.msra.mxu0 %v2079_v0  ;;  %1321 = vmatpush1.msra.mxu1 %v1618_v3  ;;  %v2082_v3 = vand.u32 4294901760, %v1616_v1  ;;  %v2084_v1 = vand.u32 4294901760, %v1635_v11  ;;  %v2087_v11 = vand.u32 4294901760, %v1667_v28  ;;  %v2093_v28 = vand.u32 4294901760, %v1737_v13 }
 0x1a0   :  { %1396 = vmatprep.mubr.f32.mxu1 %v1823_v33  ;;  %1052 = vmatprep.subr.mxu0 %v2075_v4 }
 0x1a1   :  { %1322 = vmatprep.subr.mxu1 %v2075_v4  ;;  %1055 = vmatpush2.msra.mxu0 %v2080_v53 }
 0x1a2   :  { %1324 = vmatpush1.msra.mxu1 %v1626_v7  ;;  %1061 = vmatmul.mubr.f32.vlgmr.msra.gmra.mxu0 %v1820_v39  ;;  %v2086_v7 = vand.u32 4294901760, %v1660_v24  ;;  %v2092_v24 = vand.u32 4294901760, %v1727_v61 }
 0x1a3   :  { %1180 = vmatprep.subr.mxu0 %v2075_v4  ;;  %1325 = vmatprep.subr.mxu1 %v2075_v4 }
 0x1a4   :  { %1067 = vmatprep.mubr.f32.mxu0 %v1843_v8  ;;  %1184 = vmatpush1.msra.mxu0 %v2081_v63 }
 0x1a5   :  { %1327 = vmatpush1.msra.mxu1 %v1637_v12  ;;  %1185 = vmatprep.subr.mxu0 %v2075_v4  ;;  %v2088_v12 = vand.u32 4294901760, %v1677_v34  ;;  %v2095_v34 = vand.u32 4294901760, %v2077_v9 }
 0x1a6   :  { %1328 = vmatprep.subr.mxu1 %v2075_v4  ;;  %1189 = vmatpush1.msra.mxu0 %v2082_v3 }
 0x1a7   :  { %1330 = vmatpush1.msra.mxu1 %v1649_v18  ;;  %1070 = vmatmul.mubr.f32.gmra.mxu0 %v1831_v2  ;;  %v2090_v18 = vand.u32 4294901760, %v1704_v47 }
 0x1a8   :  { %1190 = vmatprep.subr.mxu0 %v2075_v4  ;;  %1331 = vmatprep.subr.mxu1 %v2075_v4 }
 0x1a9   :  { %1194 = vmatpush1.msra.mxu0 %v2083_v57  ;;  %1299 = vmatprep.mubr.f32.mxu0 %v1823_v33 }
 0x1aa   :  { %1333 = vmatpush1.msra.mxu1 %v1656_v23  ;;  %1195 = vmatprep.subr.mxu0 %v2075_v4  ;;  %v2091_v23 = vand.u32 4294901760, %v1719_v55 }
 0x1ab   :  { %1334 = vmatprep.subr.mxu1 %v2075_v4  ;;  %1199 = vmatpush1.msra.mxu0 %v2084_v1 }
 0x1ac   :  { %1336 = vmatpush1.msra.mxu1 %v1669_v29  ;;  %1200 = vmatprep.subr.mxu0 %v2075_v4  ;;  %v2094_v29 = vand.u32 4294901760, %v1752_v25 }
 0x1ad   :  { %1337 = vmatprep.subr.mxu1 %v2075_v4  ;;  %1204 = vmatpush1.msra.mxu0 %v2085_v6 }
 0x1ae   :  { %1339 = vmatpush1.msra.mxu1 %v1679_v35  ;;  %1205 = vmatprep.subr.mxu0 %v2075_v4  ;;  %v2096_v35 = vand.u32 4294901760, %v2078_v37 }
 0x1af   :  { %1340 = vmatprep.subr.mxu1 %v2075_v4  ;;  %1209 = vmatpush1.msra.mxu0 %v2086_v7 }
 0x1b0   :  { %1342 = vmatpush1.msra.mxu1 %v1694_v41  ;;  %1210 = vmatprep.subr.mxu0 %v2075_v4  ;;  %v2098_v41 = vand.u32 4294901760, %v2080_v53 }
 0x1b1   :  { %1343 = vmatprep.subr.mxu1 %v2075_v4  ;;  %1214 = vmatpush1.msra.mxu0 %v2087_v11 }
 0x1b2   :  { %1345 = vmatpush1.msra.mxu1 %v1707_v48  ;;  %1215 = vmatprep.subr.mxu0 %v2075_v4 }
 0x1b3   :  { %1346 = vmatprep.subr.mxu1 %v2075_v4  ;;  %1219 = vmatpush1.msra.mxu0 %v2088_v12 }
 0x1b4   :  { %1348 = vmatpush1.msra.mxu1 %v1715_v54  ;;  %1220 = vmatprep.subr.mxu0 %v2075_v4 }
 0x1b5   :  { %1349 = vmatprep.subr.mxu1 %v2075_v4  ;;  %1224 = vmatpush1.msra.mxu0 %v2089_v17 }
 0x1b6   :  { %1351 = vmatpush1.msra.mxu1 %v1729_v62  ;;  %1225 = vmatprep.subr.mxu0 %v2075_v4 }
 0x1b7   :  { %1352 = vmatprep.subr.mxu1 %v2075_v4  ;;  %1229 = vmatpush1.msra.mxu0 %v2090_v18 }
 0x1b8   :  { %1354 = vmatpush1.msra.mxu1 %v1739_v14  ;;  %1230 = vmatprep.subr.mxu0 %v2075_v4 }
 0x1b9   :  { %1355 = vmatprep.subr.mxu1 %v2075_v4  ;;  %1234 = vmatpush1.msra.mxu0 %v2091_v23 }
 0x1ba   :  { %1357 = vmatpush1.msra.mxu1 %v1754_v26  ;;  %1235 = vmatprep.subr.mxu0 %v2075_v4 }
 0x1bb   :  { %1358 = vmatprep.subr.mxu1 %v2075_v4  ;;  %1239 = vmatpush1.msra.mxu0 %v2092_v24 }
 0x1bc   :  { %1360 = vmatpush1.msra.mxu1 %v1767_v42  ;;  %1240 = vmatprep.subr.mxu0 %v2075_v4 }
 0x1bd   :  { %1389 = vmatprep.subr.mxu1 %v2075_v4  ;;  %1244 = vmatpush1.msra.mxu0 %v2093_v28 }
 0x1be   :  { %1391 = vmatpush2.msra.mxu1 %v1775_v50  ;;  %1245 = vmatprep.subr.mxu0 %v2075_v4 }
 0x1bf   :  { %1392 = vmatprep.subr.mxu1 %v2075_v4  ;;  %1249 = vmatpush1.msra.mxu0 %v2094_v29 }
 0x1c0   :  { %1394 = vmatpush2.msra.mxu1 %v2076_v58  ;;  %1250 = vmatprep.subr.mxu0 %v2075_v4 }
 0x1c1   :  { %1398 = vmatmul.mubr.f32.vlgmr.msra.gmra.mxu1 %v1817_v15  ;;  %1254 = vmatpush1.msra.mxu0 %v2095_v34 }
 0x1c2   :  { %1403 = vmatprep.mubr.f32.mxu1 %v1835_v38  ;;  %1255 = vmatprep.subr.mxu0 %v2075_v4 }
 0x1c3   :  { %1259 = vmatpush1.msra.mxu0 %v2096_v35 }
 0x1c4   :  { %1288 = vmatprep.subr.mxu0 %v2075_v4 }
 0x1c5   :  { %1405 = vmatmul.mubr.f32.gmra.mxu1 %v1826_v46  ;;  %1292 = vmatpush2.msra.mxu0 %v2097_v40 }
 0x1c6   :  { %1293 = vmatprep.subr.mxu0 %v2075_v4 }
 0x1c7   :  { %1297 = vmatpush2.msra.mxu0 %v2098_v41 }
 0x1c8   :  { %1301 = vmatmul.mubr.f32.vlgmr.msra.gmra.mxu0 %v1817_v15 }
 0x1c9   :  { %1306 = vmatprep.mubr.f32.mxu0 %v1835_v38 }
 0x1cc   :  { %1308 = vmatmul.mubr.f32.gmra.mxu0 %v1826_v46 }
 0x233   :  { %v945_v47 = vpop.f32.mrf.mxu1 }
 0x235   :  { %v947_v48 = vpop.f32.mrf.mxu1 }
 0x237   :  { %v952_v54 = vpop.f32.mrf.mxu1 }
 0x239   :  { %v954_v55 = vpop.f32.mrf.mxu1 }
 0x23b   :  { %v768_v61 = vpop.f32.mrf.mxu0 }
 0x23c   :  { %v946_v62 = vadd.f32 %v945_v47, %v768_v61 }
 0x23d   :  { %v770_v13 = vpop.f32.mrf.mxu0 }
 0x240   :  { %v783_v14 = vpop.f32.mrf.mxu0 }
 0x241   :  { %v953_v25 = vadd.f32 %v952_v54, %v783_v14 }
 0x242   :  { %v785_v26 = vpop.f32.mrf.mxu0 }
 0x259   :  { %v1165_v42 = vpop.f32.mrf.mxu1 }
 0x25b   :  { %v1167_v50 = vpop.f32.mrf.mxu1 }
 0x25e   :  { %v1176_v60 = vpop.f32.mrf.mxu1 }
 0x260   :  { %v1178_v19 = vpop.f32.mrf.mxu1 }
 0x262   :  { %v1062_v39 = vpop.f32.mrf.mxu0 }
 0x263   :  { %v1063_v30 = vadd.f32 %v1062_v39, %v946_v62 }
 0x264   :  { %v1064_v15 = vpop.f32.mrf.mxu0 }
 0x265   :  { %v1166_v5 = vadd.f32 %v1165_v42, %v1063_v30 }
 0x267   :  { %v1071_v22 = vpop.f32.mrf.mxu0 }
 0x268   :  { %v1072_v46 = vadd.f32 %v1071_v22, %v953_v25 }
 0x269   :  { %v1073_v59 = vpop.f32.mrf.mxu0 }
 0x26a   :  { %v1177_v51 = vadd.f32 %v1176_v60, %v1072_v46 }
 0x281   :  { %v1399_v10 = vpop.f32.mrf.mxu1 }
 0x283   :  { %v1401_v33 = vpop.f32.mrf.mxu1 }
 0x285   :  { %v1406_v16 = vpop.f32.mrf.mxu1 }
 0x287   :  { %v1408_v52 = vpop.f32.mrf.mxu1 }
 0x288   :  { %v1302_v2 = vpop.f32.mrf.mxu0 }
 0x289   :  { %v1303_v21 = vadd.f32 %v1302_v2, %v1166_v5 }
 0x28a   :  { %v1304_v38 = vpop.f32.mrf.mxu0 }
 0x28b   :  { %v1400_v49 = vadd.f32 %v1399_v10, %v1303_v21 }
 0x28c   :  { %v1309_v4 = vpop.f32.mrf.mxu0 }
 0x28d   :  { %1410 = vst [vmem:[%s2039_s3] sm:$0xff] %v1400_v49  ;;  %v1310_v8 = vadd.f32 %v1309_v4, %v1177_v51 }
 0x28e   :  { %v1311_v27 = vpop.f32.mrf.mxu0 }
 0x28f   :  { %v1407_v36 = vadd.f32 %v1406_v16, %v1310_v8 }
 0x291   :  { %1411 = vst [vmem:[%s2039_s3 + $0x8] sm:$0xf] %v1407_v36 }
 0x292   :  { %1416 = vsyncpa [#allocation3], 1 }

</bundles_post_ra>
